<compile_context>
chip_gen: v6e
topology: v6e:2x2x1
jax: 0.10.0
libtpu: 0.0.40
codegen_flags: <defaults>
</compile_context>

<pallas_src>
import numpy as np
import jax
import jax.numpy as jnp
from jax.experimental import pallas as pl
from jax.experimental.pallas import tpu as pltpu

EPS = 1e-5


# ------------------------------ helpers -------------------------------------

def _interp_matrix(n_out, n_in):
    """1-D bilinear interpolation matrix (align_corners=True): (n_out, n_in)."""
    if n_out == 1:
        src = jnp.zeros((1,), dtype=jnp.float32)
    else:
        src = jnp.arange(n_out, dtype=jnp.float32) * (float(n_in - 1) / float(n_out - 1))
    i0 = jnp.clip(jnp.floor(src).astype(jnp.int32), 0, n_in - 1)
    i1 = jnp.minimum(i0 + 1, n_in - 1)
    w1 = src - i0.astype(jnp.float32)
    w0 = 1.0 - w1
    return (w0[:, None] * jax.nn.one_hot(i0, n_in, dtype=jnp.float32)
            + w1[:, None] * jax.nn.one_hot(i1, n_in, dtype=jnp.float32))


def _fold_bn(w, b, bn):
    """Fold inference BatchNorm into a 1x1 conv: (scaled weight, shift)."""
    scale = bn["gamma"] / jnp.sqrt(bn["var"] + EPS)          # (C_out,)
    w_f = w * scale[:, None]                                 # (C_out, C_in)
    shift = scale * (b - bn["mean"]) + bn["beta"]            # (C_out,)
    return w_f, shift


def _vmem_budget_bytes():
    """~70% of this generation's physical VMEM (leaves Mosaic scratch headroom)."""
    try:
        cap = pltpu.get_tpu_info().vmem_capacity_bytes
    except Exception:
        cap = 64 << 20          # conservative (v7x-sized) fallback
    return int(0.7 * cap)


def _pick_tile_h(Hx, Wx, Wg, Cin, Cint, B, itemsize, budget, max_lanes=4096):
    """Largest row-tile whose (double-buffered) block footprint fits the budget.

    tile_h must divide Hx and give a 128-multiple lane width (tile_h*Wx) unless
    tile_h == Hx (full-extent blocks are always legal).  When B == 1 prefer
    nt >= 2 so both v7x TensorCores get grid points.
    """
    cands = [d for d in range(Hx, 0, -1)
             if Hx % d == 0 and ((d * Wx) % 128 == 0 or d == Hx)]
    if B == 1:
        sub = [d for d in cands if d < Hx]
        if sub:
            cands = sub
    for d in cands:
        thw, k2 = d * Wx, d * Wg
        if thw > max_lanes:
            continue
        est = (2 * itemsize * (Cin * thw + Cint * k2)   # double-buffered x / phi_h tiles
               + itemsize * k2 * thw                    # resident W-upsample operator
               + 2 * 4 * thw                            # double-buffered f32 output tile
               + 4 * Cint * (Cin + 3)                   # weights / shifts
               + 3 * 4 * Cint * thw)                    # f32 intermediates (theta/phi_up/f)
        if est <= budget:
            return d
    return cands[-1]


# ----------------------------- Pallas kernel --------------------------------

def _make_kernel(cin):
    small = cin <= 8   # trace-time gate

    def kernel(x_ref, ph_ref, m2_ref, wt_ref, bt_ref, wpsi_ref, bpsi_ref, out_ref):
        x = x_ref[0]                 # (Cin,  tile_hw)   lane-dense
        ph = ph_ref[0, 0]            # (Cint, K2)        K2 = tile_h * Wg (coarse W)

        # theta(x): BN-folded 1x1 conv.
        if small:
            # Tiny-Cin regime: a Cin-deep MXU push idles >95% of the array;
            # do Cin broadcast multiply-adds on the VPU in f32 instead.
            wt = wt_ref[...].astype(jnp.float32)
            xf = x.astype(jnp.float32)
            theta = bt_ref[...] + wt[:, 0:1] * xf[0:1, :]
            for ci in range(1, cin):
                theta = theta + wt[:, ci:ci + 1] * xf[ci:ci + 1, :]
        else:
            theta = jnp.dot(wt_ref[...], x,
                            preferred_element_type=jnp.float32) + bt_ref[...]

        # phi_up: W-direction bilinear upsample of the (already H-upsampled,
        # BN-shifted) gating features -> one MXU matmul with the small resident
        # kron(I_tile_h, Rw^T) operator.  Output is already (Cint, tile_hw) in
        # the same layout as theta: no relayouts.
        phi_up = jnp.dot(ph, m2_ref[...], preferred_element_type=jnp.float32)

        # f = relu(theta_x + phi_g)
        f = jnp.maximum(theta + phi_up, 0.0)                     # (Cint, tile_hw)

        # psi(f): Cint -> 1 projection on VPU (mul) + XLU (sublane reduce),
        # then BN shift + sigmoid.  Avoids an N=1 MXU matmul.
        psi = jnp.sum(f * wpsi_ref[...], axis=0, keepdims=True) + bpsi_ref[...]
        out_ref[0] = jax.nn.sigmoid(psi)                         # (1, tile_hw)

    return kernel


# ------------------------------- wrapper -------------------------------------

def cross_attention_block(x_nchw, g_nchw, params, tile_h=None,
                          compute_dtype=jnp.bfloat16):
    B, Cin, Hx, Wx = x_nchw.shape
    Bg, Cg, Hg, Wg = g_nchw.shape
    assert B == Bg
    Cint = params["w_theta"].shape[0]
    HWx = Hx * Wx
    itemsize = jnp.dtype(compute_dtype).itemsize

    # ---- fold inference BatchNorm into the 1x1 convs ----
    wt_f, sh_t = _fold_bn(params["w_theta"], params["b_theta"], params["bn_theta"])
    wp_f, sh_p = _fold_bn(params["w_phi"], params["b_phi"], params["bn_phi"])
    wpsi_f, sh_psi = _fold_bn(params["w_psi"], params["b_psi"], params["bn_psi"])

    # ---- phi on the coarse gating grid: once per batch, in the wrapper (tiny).
    # Conv + BN shift applied BEFORE the upsample, matching the reference order.
    g_flat = g_nchw.reshape(B, Cg, Hg * Wg)
    phi = jnp.einsum('oc,bcs->bos', wp_f, g_flat) + sh_p[None, :, None]
    phi = phi.reshape(B, Cint, Hg, Wg)

    # ---- separable bilinear upsample (align_corners=True): H here, W in-kernel.
    Rh = _interp_matrix(Hx, Hg)                                   # (Hx, Hg)
    phi_h = jnp.einsum('hg,bcgw->bchw', Rh, phi)                  # (B, Cint, Hx, Wg)

    # ---- spatial tiling over fine rows ----
    budget = _vmem_budget_bytes()
    if tile_h is None:
        tile_h = _pick_tile_h(Hx, Wx, Wg, Cin, Cint, B, itemsize, budget)
    assert Hx % tile_h == 0, "tile_h must divide Hx"
    assert (tile_h * Wx) % 128 == 0 or tile_h == Hx, \
        "tile_h*Wx must be a multiple of 128 (lane-dense) unless tile_h == Hx"
    nt = Hx // tile_h
    tile_hw = tile_h * Wx
    K2 = tile_h * Wg

    # Re-block the H-upsampled phi so each grid step reads one full (Cint, K2)
    # block (cheap wrapper-side layout plumbing on a coarse-W tensor).
    phi_blk = (phi_h.reshape(B, Cint, nt, tile_h, Wg)
               .transpose(0, 2, 1, 3, 4)
               .reshape(B, nt, Cint, K2))

    # W-direction upsample operator kron(I_tile_h, Rw^T): identical for every
    # tile and batch -> constant block index -> stays resident in VMEM.
    Rw = _interp_matrix(Wx, Wg)                                   # (Wx, Wg)
    M2 = jnp.kron(jnp.eye(tile_h, dtype=jnp.float32), Rw.T)       # (K2, tile_hw)

    # channels-on-sublane, flattened-spatial-on-lane: pure reshape of NCHW.
    x_flat = x_nchw.reshape(B, Cin, HWx)

    # MXU operands in compute_dtype (bf16 halves DMA + VMEM); f32 tail.
    x_in = x_flat.astype(compute_dtype)
    ph_in = phi_blk.astype(compute_dtype)
    m2_in = M2.astype(compute_dtype)
    wt_in = wt_f.astype(compute_dtype)
    bt = sh_t.reshape(Cint, 1).astype(jnp.float32)
    wpsi_col = wpsi_f.reshape(Cint, 1).astype(jnp.float32)
    bpsi = sh_psi.reshape(1, 1).astype(jnp.float32)

    def const(shape):
        return pl.BlockSpec(shape, lambda b, t: (0,) * len(shape))

    grid_spec = pltpu.PrefetchScalarGridSpec(
        num_scalar_prefetch=0,
        grid=(B, nt),
        in_specs=[
            pl.BlockSpec((1, Cin, tile_hw), lambda b, t: (b, 0, t)),    # x row-tile
            pl.BlockSpec((1, 1, Cint, K2), lambda b, t: (b, t, 0, 0)),  # phi_h tile
            const((K2, tile_hw)),                                       # W-upsample op
            const((Cint, Cin)), const((Cint, 1)),                       # theta w / shift
            const((Cint, 1)), const((1, 1)),                            # psi   w / shift
        ],
        out_specs=pl.BlockSpec((1, 1, tile_hw), lambda b, t: (b, 0, t)),
    )

    # Advisory cost estimate matching actual DMA behaviour (operator resident,
    # phi streamed at coarse-W resolution, no dense upsample operand).
    cost = pl.CostEstimate(
        flops=int(2 * B * Cint * Cin * HWx              # theta matmul
                  + 2 * B * Cint * tile_h * Wg * HWx    # in-kernel W-upsample
                  + 5 * B * Cint * HWx + 2 * B * HWx),  # elementwise tail
        transcendentals=int(B * HWx),
        bytes_accessed=int(itemsize * (B * Cin * HWx + B * Cint * Hx * Wg
                                       + K2 * tile_hw + Cint * Cin)
                           + 4 * (B * HWx + 3 * Cint + 1)),
    )

    out = pl.pallas_call(
        _make_kernel(Cin),
        out_shape=jax.ShapeDtypeStruct((B, 1, HWx), jnp.float32),
        grid_spec=grid_spec,
        compiler_params=pltpu.CompilerParams(
            dimension_semantics=("parallel", "parallel"),
            vmem_limit_bytes=int(budget)),
        cost_estimate=cost,
    )(x_in, ph_in, m2_in, wt_in, bt, wpsi_col, bpsi)

    # (B, 1, HWx) -> (B, 1, Hx, Wx): pure reshape, no transpose
    return out.reshape(B, 1, Hx, Wx)


# ----------------------- deterministic parameter init -----------------------

def _bn_init(key, c):
    k1, k2, k3, k4 = jax.random.split(key, 4)
    return dict(gamma=0.5 + jax.random.uniform(k1, (c,), jnp.float32),
                beta=0.1 * jax.random.normal(k2, (c,), jnp.float32),
                mean=0.1 * jax.random.normal(k3, (c,), jnp.float32),
                var=0.5 + jax.random.uniform(k4, (c,), jnp.float32))


def init_params(key, in_channels, gating_channels):
    inter = in_channels  # inter_channels = in_channels in the module
    ks = jax.random.split(key, 9)
    return {
        # conv weights stored PyTorch-style as (out_channels, in_channels)
        "w_theta": 0.3 * jax.random.normal(ks[0], (inter, in_channels), jnp.float32),
        "b_theta": 0.1 * jax.random.normal(ks[1], (inter,), jnp.float32),
        "bn_theta": _bn_init(ks[2], inter),
        "w_phi": 0.3 * jax.random.normal(ks[3], (inter, gating_channels), jnp.float32),
        "b_phi": 0.1 * jax.random.normal(ks[4], (inter,), jnp.float32),
        "bn_phi": _bn_init(ks[5], inter),
        "w_psi": 0.3 * jax.random.normal(ks[6], (1, inter), jnp.float32),
        "b_psi": 0.1 * jax.random.normal(ks[7], (1,), jnp.float32),
        "bn_psi": _bn_init(ks[8], 1),
    }


# ------------------------------ pure-JAX reference --------------------------

def _bilinear_ac(img, Hout, Wout):
    """F.interpolate(mode='bilinear', align_corners=True) on NCHW."""
    B, C, Hin, Win = img.shape
    ys = (jnp.arange(Hout, dtype=jnp.float32) * (float(Hin - 1) / float(Hout - 1))
          if Hout > 1 else jnp.zeros((1,), jnp.float32))
    xs = (jnp.arange(Wout, dtype=jnp.float32) * (float(Win - 1) / float(Wout - 1))
          if Wout > 1 else jnp.zeros((1,), jnp.float32))
    y0 = jnp.clip(jnp.floor(ys).astype(jnp.int32), 0, Hin - 1)
    y1 = jnp.minimum(y0 + 1, Hin - 1)
    x0 = jnp.clip(jnp.floor(xs).astype(jnp.int32), 0, Win - 1)
    x1 = jnp.minimum(x0 + 1, Win - 1)
    wy1 = ys - y0.astype(jnp.float32); wy0 = 1.0 - wy1
    wx1 = xs - x0.astype(jnp.float32); wx0 = 1.0 - wx1
    rows0 = img[:, :, y0, :]
    rows1 = img[:, :, y1, :]
    top = rows0[..., x0] * wx0 + rows0[..., x1] * wx1
    bot = rows1[..., x0] * wx0 + rows1[..., x1] * wx1
    return top * wy0[:, None] + bot * wy1[:, None]


def reference(x, g, p):
    def conv_bn(inp, w, b, bn):
        z = jnp.einsum('oc,bchw->bohw', w, inp,
                       precision=jax.lax.Precision.HIGHEST)
        z = z + b[None, :, None, None]
        inv = (bn["gamma"] / jnp.sqrt(bn["var"] + EPS))[None, :, None, None]
        return (z - bn["mean"][None, :, None, None]) * inv + bn["beta"][None, :, None, None]

    _, _, Hx, Wx = x.shape
    theta_x = conv_bn(x, p["w_theta"], p["b_theta"], p["bn_theta"])
    phi_low = conv_bn(g, p["w_phi"], p["b_phi"], p["bn_phi"])
    phi_g = _bilinear_ac(phi_low, Hx, Wx)
    f = jnp.maximum(theta_x + phi_g, 0.0)
    psi = conv_bn(f, p["w_psi"], p["b_psi"], p["bn_psi"])
    return jax.nn.sigmoid(psi)


# ----------------------------------- main -----------------------------------

if __name__ == "__main__":
    key = jax.random.PRNGKey(0)
    kx, kg, kp = jax.random.split(key, 3)

    B, Cin, Hx, Wx = 2, 4, 16, 16       # x: skip-connection feature map
    Cg, Hg, Wg = 8, 8, 8                # g: gating signal (coarser grid)

    x = jax.random.normal(kx, (B, Cin, Hx, Wx), jnp.float32)
    g = jax.random.normal(kg, (B, Cg, Hg, Wg), jnp.float32)
    params = init_params(kp, Cin, Cg)

    # tile_h=8 -> (B, 2) grid of lane-dense 128-wide tiles
    out = cross_attention_block(x, g, params, tile_h=8)
    out = jax.block_until_ready(out)
    assert out.shape == (B, 1, Hx, Wx)

    ref = reference(x, g, params)
    np.testing.assert_allclose(np.asarray(out), np.asarray(ref),
                               atol=2e-2, rtol=2e-2)
    print("KERNEL_OK")
</pallas_src>

<mosaic_0001>
module attributes {stable_mosaic.version = 11 : i64} {
  func.func @kernel(%arg0: i32, %arg1: i32, %arg2: memref<1x4x128xbf16, #tpu.memory_space<vmem>>, %arg3: memref<1x1x4x64xbf16, #tpu.memory_space<vmem>>, %arg4: memref<64x128xbf16, #tpu.memory_space<vmem>>, %arg5: memref<4x4xbf16, #tpu.memory_space<vmem>>, %arg6: memref<4x1xf32, #tpu.memory_space<vmem>>, %arg7: memref<4x1xf32, #tpu.memory_space<vmem>>, %arg8: memref<1x1xf32, #tpu.memory_space<vmem>>, %arg9: memref<1x1x128xf32, #tpu.memory_space<vmem>>) attributes {dimension_semantics = [#tpu.dimension_semantics<parallel>, #tpu.dimension_semantics<parallel>], iteration_bounds = array<i64: 2, 2>, scalar_prefetch = 0 : i64, scratch_operands = 0 : i64, tpu.core_type = #tpu.core_type<tc>, window_params = [{transform_indices = @transform_0, window_bounds = array<i64: 1, 4, 128>}, {transform_indices = @transform_1, window_bounds = array<i64: 1, 1, 4, 64>}, {pipeline_mode = #tpu.pipeline_mode<synchronous>, transform_indices = @transform_2, window_bounds = array<i64: 64, 128>}, {pipeline_mode = #tpu.pipeline_mode<synchronous>, transform_indices = @transform_3, window_bounds = array<i64: 4, 4>}, {pipeline_mode = #tpu.pipeline_mode<synchronous>, transform_indices = @transform_4, window_bounds = array<i64: 4, 1>}, {pipeline_mode = #tpu.pipeline_mode<synchronous>, transform_indices = @transform_5, window_bounds = array<i64: 4, 1>}, {pipeline_mode = #tpu.pipeline_mode<synchronous>, transform_indices = @transform_6, window_bounds = array<i64: 1, 1>}, {transform_indices = @transform_7, window_bounds = array<i64: 1, 1, 128>}]} {
    %c0 = arith.constant 0 : index
    %c0_0 = arith.constant 0 : index
    %c0_1 = arith.constant 0 : index
    %0 = vector.load %arg2[%c0, %c0_0, %c0_1] : memref<1x4x128xbf16, #tpu.memory_space<vmem>>, vector<1x4x128xbf16>
    %1 = vector.shape_cast %0 : vector<1x4x128xbf16> to vector<4x128xbf16>
    %c0_2 = arith.constant 0 : index
    %c0_3 = arith.constant 0 : index
    %c0_4 = arith.constant 0 : index
    %c0_5 = arith.constant 0 : index
    %2 = vector.load %arg3[%c0_2, %c0_3, %c0_4, %c0_5] : memref<1x1x4x64xbf16, #tpu.memory_space<vmem>>, vector<1x1x4x64xbf16>
    %3 = vector.shape_cast %2 : vector<1x1x4x64xbf16> to vector<4x64xbf16>
    %c0_6 = arith.constant 0 : index
    %c0_7 = arith.constant 0 : index
    %4 = vector.load %arg5[%c0_6, %c0_7] : memref<4x4xbf16, #tpu.memory_space<vmem>>, vector<4x4xbf16>
    %5 = arith.extf %4 : vector<4x4xbf16> to vector<4x4xf32>
    %6 = arith.extf %1 : vector<4x128xbf16> to vector<4x128xf32>
    %c0_8 = arith.constant 0 : index
    %c0_9 = arith.constant 0 : index
    %7 = vector.load %arg6[%c0_8, %c0_9] : memref<4x1xf32, #tpu.memory_space<vmem>>, vector<4x1xf32>
    %8 = vector.extract_strided_slice %5 {offsets = [0, 0], sizes = [4, 1], strides = [1, 1]} : vector<4x4xf32> to vector<4x1xf32>
    %9 = vector.extract_strided_slice %6 {offsets = [0, 0], sizes = [1, 128], strides = [1, 1]} : vector<4x128xf32> to vector<1x128xf32>
    %10 = vector.broadcast %8 : vector<4x1xf32> to vector<4x128xf32>
    %11 = vector.broadcast %9 : vector<1x128xf32> to vector<4x128xf32>
    %12 = arith.mulf %10, %11 : vector<4x128xf32>
    %13 = vector.broadcast %7 : vector<4x1xf32> to vector<4x128xf32>
    %14 = arith.addf %13, %12 : vector<4x128xf32>
    %15 = vector.extract_strided_slice %5 {offsets = [0, 1], sizes = [4, 1], strides = [1, 1]} : vector<4x4xf32> to vector<4x1xf32>
    %16 = vector.extract_strided_slice %6 {offsets = [1, 0], sizes = [1, 128], strides = [1, 1]} : vector<4x128xf32> to vector<1x128xf32>
    %17 = vector.broadcast %15 : vector<4x1xf32> to vector<4x128xf32>
    %18 = vector.broadcast %16 : vector<1x128xf32> to vector<4x128xf32>
    %19 = arith.mulf %17, %18 : vector<4x128xf32>
    %20 = arith.addf %14, %19 : vector<4x128xf32>
    %21 = vector.extract_strided_slice %5 {offsets = [0, 2], sizes = [4, 1], strides = [1, 1]} : vector<4x4xf32> to vector<4x1xf32>
    %22 = vector.extract_strided_slice %6 {offsets = [2, 0], sizes = [1, 128], strides = [1, 1]} : vector<4x128xf32> to vector<1x128xf32>
    %23 = vector.broadcast %21 : vector<4x1xf32> to vector<4x128xf32>
    %24 = vector.broadcast %22 : vector<1x128xf32> to vector<4x128xf32>
    %25 = arith.mulf %23, %24 : vector<4x128xf32>
    %26 = arith.addf %20, %25 : vector<4x128xf32>
    %27 = vector.extract_strided_slice %5 {offsets = [0, 3], sizes = [4, 1], strides = [1, 1]} : vector<4x4xf32> to vector<4x1xf32>
    %28 = vector.extract_strided_slice %6 {offsets = [3, 0], sizes = [1, 128], strides = [1, 1]} : vector<4x128xf32> to vector<1x128xf32>
    %29 = vector.broadcast %27 : vector<4x1xf32> to vector<4x128xf32>
    %30 = vector.broadcast %28 : vector<1x128xf32> to vector<4x128xf32>
    %31 = arith.mulf %29, %30 : vector<4x128xf32>
    %32 = arith.addf %26, %31 : vector<4x128xf32>
    %c0_10 = arith.constant 0 : index
    %c0_11 = arith.constant 0 : index
    %33 = vector.load %arg4[%c0_10, %c0_11] : memref<64x128xbf16, #tpu.memory_space<vmem>>, vector<64x128xbf16>
    %cst = arith.constant dense<0.000000e+00> : vector<4x128xf32>
    %34 = tpu.matmul %3, %33, %cst {dimension_numbers = #tpu.dot_dimension_numbers<[1], [0], [0], [1], [0, 0, 1, 1], [], []>} : vector<4x64xbf16>, vector<64x128xbf16>, vector<4x128xf32> -> vector<4x128xf32>
    %35 = arith.addf %32, %34 : vector<4x128xf32>
    %cst_12 = arith.constant 0.000000e+00 : f32
    %36 = vector.broadcast %cst_12 : f32 to vector<4x128xf32>
    %37 = arith.maximumf %35, %36 : vector<4x128xf32>
    %c0_13 = arith.constant 0 : index
    %c0_14 = arith.constant 0 : index
    %38 = vector.load %arg7[%c0_13, %c0_14] : memref<4x1xf32, #tpu.memory_space<vmem>>, vector<4x1xf32>
    %39 = vector.broadcast %38 : vector<4x1xf32> to vector<4x128xf32>
    %40 = arith.mulf %37, %39 : vector<4x128xf32>
    %cst_15 = arith.constant dense<0.000000e+00> : vector<128xf32>
    %41 = vector.multi_reduction <add>, %40, %cst_15 [0] : vector<4x128xf32> to vector<128xf32>
    %42 = vector.shape_cast %41 : vector<128xf32> to vector<1x128xf32>
    %c0_16 = arith.constant 0 : index
    %c0_17 = arith.constant 0 : index
    %43 = vector.load %arg8[%c0_16, %c0_17] : memref<1x1xf32, #tpu.memory_space<vmem>>, vector<1x1xf32>
    %44 = vector.broadcast %43 : vector<1x1xf32> to vector<1x128xf32>
    %45 = arith.addf %42, %44 : vector<1x128xf32>
    %46 = arith.negf %45 : vector<1x128xf32>
    %47 = math.exp %46 : vector<1x128xf32>
    %cst_18 = arith.constant 1.000000e+00 : f32
    %48 = vector.broadcast %cst_18 : f32 to vector<1x128xf32>
    %49 = arith.addf %48, %47 : vector<1x128xf32>
    %50 = arith.divf %48, %49 : vector<1x128xf32>
    %c0_19 = arith.constant 0 : index
    %c0_20 = arith.constant 0 : index
    %c0_21 = arith.constant 0 : index
    %51 = vector.load %arg9[%c0_19, %c0_20, %c0_21] : memref<1x1x128xf32, #tpu.memory_space<vmem>>, vector<1x1x128xf32>
    %52 = vector.shape_cast %51 : vector<1x1x128xf32> to vector<1x128xf32>
    %53 = vector.shape_cast %50 : vector<1x128xf32> to vector<1x1x128xf32>
    tpu.vector_store %arg9[%c0_19, %c0_20, %c0_21], %53 {strides = array<i32>} : memref<1x1x128xf32, #tpu.memory_space<vmem>>, vector<1x1x128xf32>,
    return
  }
  func.func @transform_0(%arg0: i32, %arg1: i32) -> (i32, i32, i32) {
    %c0_i32 = arith.constant 0 : i32
    %c0_i32_0 = arith.constant 0 : i32
    return %arg0, %c0_i32, %arg1 : i32, i32, i32
  }
  func.func @transform_1(%arg0: i32, %arg1: i32) -> (i32, i32, i32, i32) {
    %c0_i32 = arith.constant 0 : i32
    %c0_i32_0 = arith.constant 0 : i32
    %c0_i32_1 = arith.constant 0 : i32
    return %arg0, %arg1, %c0_i32, %c0_i32_0 : i32, i32, i32, i32
  }
  func.func @transform_2(%arg0: i32, %arg1: i32) -> (i32, i32) {
    %c0_i32 = arith.constant 0 : i32
    %c0_i32_0 = arith.constant 0 : i32
    %c0_i32_1 = arith.constant 0 : i32
    return %c0_i32, %c0_i32_0 : i32, i32
  }
  func.func @transform_3(%arg0: i32, %arg1: i32) -> (i32, i32) {
    %c0_i32 = arith.constant 0 : i32
    %c0_i32_0 = arith.constant 0 : i32
    %c0_i32_1 = arith.constant 0 : i32
    return %c0_i32, %c0_i32_0 : i32, i32
  }
  func.func @transform_4(%arg0: i32, %arg1: i32) -> (i32, i32) {
    %c0_i32 = arith.constant 0 : i32
    %c0_i32_0 = arith.constant 0 : i32
    %c0_i32_1 = arith.constant 0 : i32
    return %c0_i32, %c0_i32_0 : i32, i32
  }
  func.func @transform_5(%arg0: i32, %arg1: i32) -> (i32, i32) {
    %c0_i32 = arith.constant 0 : i32
    %c0_i32_0 = arith.constant 0 : i32
    %c0_i32_1 = arith.constant 0 : i32
    return %c0_i32, %c0_i32_0 : i32, i32
  }
  func.func @transform_6(%arg0: i32, %arg1: i32) -> (i32, i32) {
    %c0_i32 = arith.constant 0 : i32
    %c0_i32_0 = arith.constant 0 : i32
    %c0_i32_1 = arith.constant 0 : i32
    return %c0_i32, %c0_i32_0 : i32, i32
  }
  func.func @transform_7(%arg0: i32, %arg1: i32) -> (i32, i32, i32) {
    %c0_i32 = arith.constant 0 : i32
    %c0_i32_0 = arith.constant 0 : i32
    return %arg0, %c0_i32, %arg1 : i32, i32, i32
  }
}

</mosaic_0001>

<bundles_post_ra>
// kernel: tpu_custom_call.1
= control target key start
LH: loop header
LB: loop body
LE: loop exit
PB: predicated region body
PF: predicated region fallthrough
CT: control target
= control target key end

     0   :  { %s1248_s0 = inlined_call_operand.vmem [shape: bf16[2,4,256], index: 0, kind: input, shape index: {}]   ;;  %s1249_s1 = inlined_call_operand.hbm [shape: bf16[2,2,4,64], index: 1, kind: input, shape index: {}]   ;;  %s1250_s2 = inlined_call_operand.hbm [shape: bf16[64,128], index: 2, kind: input, shape index: {}]   ;;  %s1251_s3 = inlined_call_operand.vmem [shape: bf16[4,4], index: 3, kind: input, shape index: {}]   ;;  %s1252_s4 = inlined_call_operand.vmem [shape: f32[4,1], index: 4, kind: input, shape index: {}]   ;;  %s1253_s5 = inlined_call_operand.vmem [shape: f32[4,1], index: 5, kind: input, shape index: {}]   ;;  %s1254_s6 = inlined_call_operand.<no memory space> [shape: f32[1,1], index: 6, kind: input, shape index: {}]   ;;  %s1255_s7 = inlined_call_operand.hbm [shape: f32[2,1,256], index: 7, kind: output, shape index: {}]  }
   0x1   :  { %1263 = sst [smem:[#allocation16_spill]] %s1248_s0  ;;  %v12_v0 = vstv %s1254_s6 }
   0x2   :  { %1264 = sst [smem:[#allocation17_spill]] %s1250_s2  ;;  %13 = vst [vmem:[#allocation2] sm:$0x1] %v12_v0 }
   0x3   :  { %1265 = sst [smem:[#allocation18_spill]] %s1253_s5 }
   0x4   :  { %1266 = sst [smem:[#allocation19_spill]] %s1255_s7 }
   0x5   :  { %14 = vsyncpa [#allocation4], 0 }
   0x6   :  { %16 = vsyncpa [#allocation4 + $0x1], 0 }
   0x7   :  { %17 = vsyncpa [#allocation7], 0 }
   0x8   :  { %18 = vsyncpa [#allocation5], 0 }
   0x9   :  { %20 = vsyncpa [#allocation5 + $0x1], 0  ;;  %s1039_s26 = smov 0   ;;  %s1041_s27 = smov 0  }
   0xa   :  { %s1043_s28 = smov 0   ;;  %s1045_s29 = smov 0  }
   0xb   :  { %s1047_s30 = smov 0   ;;  %s1049_s8 = smov 0  }
   0xc   :  { %s1051_s9 = smov 0   ;;  %s1053_s6 = smov 0  }
   0xd LB: > { %1267 = sst [smem:[#allocation12_spill]] %s954_s26  ;;  %s675_s10 = sadd.s32 4294967295, %s982_s6   ;;  %s982_s6 = sphi %s1053_s6, %s26_s6   ;;  %s978_s9 = sphi %s1051_s9, %s1295_s9   ;;  %s974_s8 = sphi %s1049_s8, %s1294_s8   ;;  %s970_s30 = sphi %s1047_s30, %s1293_s30   ;;  %s966_s29 = sphi %s1045_s29, %s1292_s29   ;;  %s962_s28 = sphi %s1043_s28, %s1291_s28   ;;  %s958_s27 = sphi %s1041_s27, %s1290_s27   ;;  %s954_s26 = sphi %s1039_s26, %s1289_s26  }
   0xe   : > { %s676_s11 = sadd.s32 4294967294, %s982_s6   ;;  %p88_p0 = scmp.ne.s32.totalorder %s958_s27, %s954_s26 }
   0xf   : > { %p1083_p1 = scmp.eq.s32.totalorder %s675_s10, 0  ;;  %p1087_p2 = scmp.eq.s32.totalorder %s675_s10, 3 }
  0x10   : > { %p225_p3 = scmp.eq.s32.totalorder %s676_s11, 3  ;;  %p677_p5 = scmp.ge.s32.totalorder %s982_s6, 1 }
  0x11   : > { %p1093_p4 = por %p1083_p1, %p88_p0  ;;  %p232_p7 = scmp.lt.s32.totalorder %s982_s6, 5 }
  0x12   : > { %p1098_p6 = por %p225_p3, %p88_p0  ;;  %s984_s17 = smov [#allocation6]  }
  0x13   : > { %s1270_s14 = scalar_select %p1093_p4, 1, 0 }
  0x14   : > { %s1271_s15 = scalar_select %p1098_p6, 1, 0 }
  0x15   : > { %p1103_p8 = pnand %p677_p5, %p232_p7  ;;  %s244_s18 = sshll.u32 %s984_s17, 4  ;;  %s245_s18 = int_to_ptr.vmem [resolvable:$true] %s244_s18 }
  0x16   : > { %1272 = sst [smem:[#allocation13_spill]] %s1271_s15  ;;  %s839_s19 = scalar_lea.vmem %s245_s18, 512 }
  0x17   : > { %p723_p9 = pneg %p1103_p8  ;;  %p840_p12 = scmp.ne.s32.totalorder %s245_s18, %s839_s19 }
  0x18   : > { %p847_p3 = scmp.lt.s32.totalorder %s245_s18, %s245_s18  ;;  %p848_p6 = scmp.lt.s32.totalorder %s839_s19, %s839_s19 }
  0x19   : > { %p724_p10 = pnand %p723_p9, %p1083_p1 }
  0x1a   : > { %p849_p4 = por %p848_p6, %p847_p3 }
  0x1b   : > { %p830_p11 = pneg %p724_p10 }
  0x1d   : > { %p842_p13 = pnand %p840_p12, %p830_p11 }
  0x1f   : > { %p843_p0 = pneg %p842_p13 }
  0x21   : > { %p850_p5 = pnand %p849_p4, %p843_p0 }
  0x23   : > { %853 = shalt.err (!%p850_p5)
}
  0x24   : > { %s985_s20 = smov 64   ;;  %s986_s21 = smov 4  }
  0x25   : > { %s1274_s2 = sld [smem:[#allocation17_spill]]  ;;  %s35_s24 = sadd.s32 1, %s974_s8 }
  0x26   : > { %p36_p4 = scmp.ge.s32.totalorder %s35_s24, 2  ;;  %s38_s25 = sadd.s32 1, %s978_s9 }
  0x27   : > { %s75_s10 = sadd.s32 1, %s962_s28  ;;  %p82_p6 = scmp.ne.s32.totalorder %s962_s28, %s958_s27 }
  0x28   : > { %s1297_s24 = smov (%p36_p4, %s35_s24), 0  ;;  %s1299_s25 = smov (!%p36_p4, %s38_s25), %s978_s9 }
  0x29   : > { %1275 = sst [smem:[#allocation14_spill]] %s1297_s24  ;;  %s71_s11 = ssub.s32 %s974_s8, %s1297_s24 }
  0x2a   : > { %p83_p7 = scmp.eq.s32.totalorder %s982_s6, 0  ;;  %p40_p9 = scmp.ge.s32.totalorder %s1299_s25, 2 }
  0x2b   : > { %726 = dma.hbm_to_vmem [thread:$0]  (!%p724_p10), %s1274_s2, 512, %s245_s18, [#allocation7], %s985_s20, %s985_s20, %s986_s21  }
  0x2c   : > { %p1127_p11 = por %p1087_p2, %p82_p6  ;;  %p1131_p10 = por %p83_p7, %p82_p6 }
  0x2d   : > { %p736_p12 = scmp.lt.s32.totalorder %s982_s6, 4  ;;  %s1301_s25 = smov (%p40_p9, %s1299_s25), 0 }
  0x2e   : > { %s1276_s17 = scalar_select %p1127_p11, 1, 0 }
  0x2f   : > { %s281_s19 = sand.u32 1, %s962_s28   ;;  %s681_s20 = sshll.u32 %s978_s9, 1 }
  0x30   : > { %1277 = sst [smem:[#allocation15_spill]] %s1276_s17  ;;  %s70_s21 = ssub.s32 %s978_s9, %s1301_s25 }
  0x31   : > { %s72_s22 = sor.u32 %s71_s11, %s70_s21  ;;  %s680_s23 = sshll.u32 %s281_s19, 1 }
  0x32   : > { %p73_p13 = scmp.eq.s32.totalorder %s72_s22, 0  ;;  %s290_s13 = sadd.s32 %s974_s8, %s681_s20 }
  0x33   : > { %s285_s2 = scalar_lea.vmem [#allocation3], %s680_s23  ;;  %s682_s26 = sshll.u32 %s290_s13, 5 }
  0x34   : > { %s294_s24 = sshll.u32 %s285_s2, 4  ;;  %s292_s0 = scalar_lea.hbm %s1249_s1, %s682_s26  ;;  %s295_s24 = int_to_ptr.vmem [resolvable:$true] %s294_s24 }
  0x35   : > { %s1144_s15 = scalar_select %p73_p13, %s962_s28, %s75_s10  }
  0x36   : > { %p1153_p2 = pnand %p736_p12, %p1131_p10  ;;  %s282_s11 = scalar_lea.sflag [#allocation4], %s281_s19 }
  0x37   : > { %s867_s20 = scalar_lea.vmem %s295_s24, 32  ;;  %s987_s2 = smov [#allocation3]  }
  0x38   : > { %p856_p0 = pneg %p1153_p2  ;;  %p868_p3 = scmp.ne.s32.totalorder %s295_s24, %s867_s20 }
  0x39   : > { %s872_s10 = sshll.u32 %s987_s2, 4  ;;  %s873_s10 = int_to_ptr.vmem [resolvable:$false] %s872_s10 }
  0x3a   : > { %p870_p5 = pnand %p868_p3, %p856_p0  ;;  %s874_s21 = scalar_lea.vmem %s873_s10, 64 }
  0x3b   : > { %p875_p6 = scmp.lt.s32.totalorder %s295_s24, %s873_s10  ;;  %p876_p7 = scmp.lt.s32.totalorder %s874_s21, %s867_s20 }
  0x3c   : > { %p871_p4 = pneg %p870_p5 }
  0x3d   : > { %p877_p9 = por %p876_p7, %p875_p6 }
  0x3f   : > { %p878_p13 = pnand %p877_p9, %p871_p4 }
  0x41   : > { %881 = shalt.err (!%p878_p13)
}
  0x42   : > { %730 = dma.hbm_to_vmem [thread:$0]  (!%p1153_p2), %s292_s0, 32, %s295_s24, %s282_s11  }
  0x43   : > { %303 = sbr.rel (%p1103_p8) target bundleno = 352 (0x160), region = 48  ;;  %s1164_s7 = sand.u32 (!%p1103_p8), 1, %s958_s27  }
  0x44   : > { %s684_s26 = sshll.u32 (!%p1103_p8), %s1164_s7, 1  ;;  %s306_s17 = scalar_lea.sflag (!%p1103_p8), [#allocation4], %s1164_s7 }
  0x45   : > { %s1168_s18 = scalar_lea.vmem (!%p1103_p8), [#allocation3], %s684_s26  ;;  %p1280_p10 = scmp.ne.s32.totalorder (!%p1103_p8), %s1270_s14, 0 }
  0x48   : > { %941 = dma.done.wait (%p1280_p10), %s306_s17, 32  }
  0x49   : > { %943 = vsyncadd (%p1280_p10), %s306_s17, 4294967264 }
  0x4a   : > { %945 = dma.done.wait (%p1083_p1), [#allocation7], 512  }
  0x4b   : > { %947 = vsyncadd (%p1083_p1), [#allocation7], 4294966784  ;;  %v988_v1 = vmov 0.0   ;;  %vm989_vm0 = vmmov 0   ;;  %v990_v2 = vmov 0   ;;  %v820_v3 = vld [vmem:[#allocation6 + $0x18] sm:$0xff]   ;;  %v374_v18 = vlaneseq }
  0x4c   : > { %703 = vmatprep.subr.bf16.mxu0 %v988_v1  ;;  %711 = vmatprep.mubr.msk.bf16.mxu0 %vm989_vm0, %v988_v1  ;;  %v821_v4 = vld [vmem:[#allocation6 + $0x10] sm:$0xff]   ;;  %v365_v5 = vld [vmem:[%s1252_s4] sm:$0xf]  ;;  %v822_v8 = vld [vmem:[#allocation6 + $0x8] sm:$0xff]   ;;  %v991_v9 = vmov 2   ;;  %v992_v11 = vmov 1  }
  0x4d   : > { %815 = vset.pattern.permute.xlu1 %v990_v2  ;;  %813 = vset.pattern.permute.xlu0 %v990_v2  ;;  %v362_v6 = vld [vmem:[%s1251_s3] sm:$0x3]  ;;  %v823_v10 = vld [vmem:[#allocation6] sm:$0xff]   ;;  %vm472_vm1 = vcmask 523264   ;;  %v993_v13 = vmov 3   ;;  %s1281_s19 = sld [smem:[#allocation18_spill]] }
  0x4e   : > { %704 = vmatpush3.bf16.msra.mxu0 %v820_v3  ;;  %385 = vperm.xlu1 %815, %v365_v5   ;;  %v363_v7 = vunpack.c.l.bf16 %v362_v6  ;;  %v361_v12 = vld [vmem:[%s1168_s18] sm:$0x3]  ;;  %v533_v15 = vld [vmem:[#allocation2] sm:$0x1]  ;;  %p351_p1 = scmp.lt.s32.totalorder %s970_s30, 1  ;;  %p353_p8 = scmp.lt.s32.totalorder %s966_s29, 1 }
  0x4f   : > { %705 = vmatprep.subr.bf16.mxu0 %v988_v1  ;;  %v994_v16 = vmov 839922192   ;;  %s1282_s21 = sld [smem:[#allocation16_spill]]  ;;  %v375_v20 = vshrl.u32 %v374_v18, 7  ;;  %vm525_vm2 = vcmask 1043456   ;;  %s694_s18 = sshll.u32 %s970_s30, 1 }
  0x50   : > { %368 = vperm.xlu0 %813, %v363_v7   ;;  %s352_s22 = scalar_select %p351_p1, %s970_s30, 1  ;;  %v372_v17 = vunpack.c.l.s4 %v994_v16 }
  0x51   : > { %s354_s23 = scalar_select %p353_p8, %s966_s29, 1  ;;  %v380_v24 = vsub.s32 0, %v375_v20  ;;  %v402_v29 = vsub.s32 1, %v375_v20  ;;  %v419_v31 = vsub.s32 2, %v375_v20  ;;  %v436_v40 = vsub.s32 3, %v375_v20 }
  0x52   : > { %706 = vmatpush3.bf16.msra.mxu0 %v821_v4  ;;  %816 = vset.pattern.permute.xlu1 %v991_v9  ;;  %s686_s13 = sshll.u32 %s352_s22, 1  ;;  %v373_v19 = vunpack.c.0.s8 %v372_v17  ;;  %s562_s0 = sadd.s32 %s966_s29, %s694_s18 }
  0x53   : > { %707 = vmatprep.subr.bf16.mxu0 %v988_v1  ;;  %407 = vperm.xlu1 %816, %v363_v7   ;;  %v518_v14 = vld [vmem:[%s1281_s19] sm:$0xf]  ;;  %s356_s11 = sadd.s32 %s686_s13, %s354_s23  ;;  %s695_s5 = sshll.u32 %s562_s0, 4 }
  0x54   : > { %814 = vset.pattern.permute.xlu0 %v992_v11  ;;  %s687_s20 = sshll.u32 %s356_s11, 1  ;;  %v376_v23 = vsub.s32 %v373_v19, %v375_v20  ;;  %s350_s14 = scalar_lea.vmem [#allocation8], %s1164_s7 }
  0x55   : > { %390 = vperm.xlu0 %814, %v363_v7   ;;  %s358_s26 = scalar_lea.vmem %s1282_s21, %s687_s20  ;;  %s566_s16 = sshll.u32 %s350_s14, 4  ;;  %s567_s16 = int_to_ptr.vmem [resolvable:$true] %s566_s16 }
  0x56   : > { %708 = vmatpush3.bf16.msra.mxu0 %v822_v8  ;;  %v360_v21 = vld [vmem:[%s358_s26] sm:$0x3]  ;;  %s1284_s19 = sld [smem:[#allocation19_spill]]  ;;  %s552_s23 = scalar_lea.sflag [#allocation5], %s1164_s7 }
  0x57   : > { %709 = vmatprep.subr.bf16.mxu0 %v988_v1  ;;  %817 = vset.pattern.permute.xlu1 %v993_v13  ;;  %v364_v25 = vunpack.c.l.bf16 %v360_v21  ;;  %s882_s13 = scalar_lea.vmem %s567_s16, 16  ;;  %s995_s11 = smov [#allocation8]  }
  0x58   : > { %424 = vperm.xlu1 %817, %v363_v7   ;;  %p883_p12 = scmp.ne.s32.totalorder %s567_s16, %s882_s13  ;;  %s886_s30 = sshll.u32 %s995_s11, 4  ;;  %s887_s30 = int_to_ptr.vmem [resolvable:$false] %s886_s30 }
  0x59   : > { %818 = vset.pattern.permute.xlu0 %v990_v2  ;;  %v381_v28 = vrot.slane %v364_v25, %v380_v24  ;;  %v403_v35 = vrot.slane %v364_v25, %v402_v29  ;;  %v420_v36 = vrot.slane %v364_v25, %v419_v31  ;;  %v437_v45 = vrot.slane %v364_v25, %v436_v40  ;;  %s888_s29 = scalar_lea.vmem %s887_s30, 32  ;;  %p889_p3 = scmp.lt.s32.totalorder %s567_s16, %s887_s30 }
  0x5a   : > { %710 = vmatpush3.bf16.msra.mxu0 %v823_v10  ;;  %521 = vperm.xlu0 %818, %v518_v14   ;;  %p884_p2 = pnand %p883_p12, %p1127_p11  ;;  %p890_p5 = scmp.lt.s32.totalorder %s888_s29, %s882_s13 }
  0x5c   : > { %819 = vset.pattern.permute.xlu1 %v990_v2  ;;  %s1201_s22 = scalar_lea.hbm %s1284_s19, %s695_s5  ;;  %p885_p0 = pneg %p884_p2 }
  0x5d   : > { %712 = vmatmul.mubr.msk.bf16.vlgmr.msra.gmra.mxu0 %vm472_vm1, %v361_v12  ;;  %536 = vperm.xlu1 %819, %v533_v15   ;;  %p891_p4 = por %p890_p5, %p889_p3 }
  0x5f   : > { %p892_p6 = pnand %p891_p4, %p885_p0 }
  0xc9   : > { %v386_v26 = vpop.permute.xlu1 %385 }
  0xcb   : > { %v369_v22 = vpop.permute.xlu0 %368 }
  0xcc   : > { %v377_v27 = vrot.slane %v369_v22, %v376_v23 }
  0xce   : > { %v408_v32 = vpop.permute.xlu1 %407  ;;  %v382_v33 = vmul.f32 %v381_v28, %v377_v27 }
  0xcf   : > { %v416_v38 = vrot.slane %v408_v32, %v376_v23 }
  0xd0   : > { %v391_v30 = vpop.permute.xlu0 %390  ;;  %v388_v37 = vadd.f32 %v386_v26, %v382_v33 }
  0xd1   : > { %v399_v34 = vrot.slane %v391_v30, %v376_v23  ;;  %v421_v42 = vmul.f32 %v420_v36, %v416_v38 }
  0xd3   : > { %v404_v39 = vmul.f32 %v403_v35, %v399_v34  ;;  %v425_v41 = vpop.permute.xlu1 %424 }
  0xd4   : > { %v433_v44 = vrot.slane %v425_v41, %v376_v23 }
  0xd5   : > { %v405_v43 = vadd.f32 %v404_v39, %v388_v37  ;;  %v522_v52 = vpop.permute.xlu0 %521 }
  0xd6   : > { %v438_v46 = vmul.f32 %v437_v45, %v433_v44 }
  0xd7   : > { %v422_v47 = vadd.f32 %v421_v42, %v405_v43 }
  0xd8   : > { %v537_v61 = vpop.permute.xlu1 %536 }
  0xd9   : > { %v439_v48 = vadd.f32 %v438_v46, %v422_v47  ;;  %v542_v0 = vrot.slane %v537_v61, %v380_v24 }
 0x11d   : > { %v510_v49 = vpop.f32.mrf.mxu0 }
 0x11e   : > { %v516_v50 = vadd.f32 %v510_v49, %v439_v48 }
 0x11f   : > { %v713_v51 = vpop.f32.mrf.mxu0 }
 0x120   : > { %v517_v53 = vmax.f32 %v516_v50, 0.0 }
 0x121   : > { %v513_v54 = vpop.f32.mrf.mxu0 }
 0x122   : > { %v524_v55 = vmul.f32 %v522_v52, %v517_v53 }
 0x123   : > { %v714_v56 = vpop.f32.mrf.mxu0 }
 0x124   : > { %v526_v57 = vsel %vm525_vm2, %v524_v55, 0.0 }
 0x125   : > { %v527_v58 = vrot.slane %v526_v57, 4 }
 0x127   : > { %v528_v59 = vadd.f32 %v527_v58, %v526_v57 }
 0x129   : > { %v529_v60 = vrot.slane %v528_v59, 2 }
 0x12b   : > { %v530_v62 = vadd.f32 %v529_v60, %v528_v59 }
 0x12d   : > { %v531_v63 = vrot.slane %v530_v62, 1 }
 0x12f   : > { %v532_v1 = vadd.f32 %v531_v63, %v530_v62 }
 0x131   : > { %v543_v2 = vadd.f32 %v542_v0, %v532_v1 }
 0x133   : > { %v693_v3 = vmul.f32 -1.442695, %v543_v2 }
 0x135   : > { %824 = vpow2.f32 %v693_v3 }
 0x142   : > { %v825_v4 = vpop.eup %824 }
 0x143   : > { %v547_v5 = vadd.f32 1.0, %v825_v4 }
 0x145   : > { %826 = vrcp.f32 %v547_v5 }
 0x152   : > { %v827_v6 = vpop.eup %826 }
 0x153   : > { %550 = vst [vmem:[%s350_s14] sm:$0x1] %v827_v6 }
 0x154   : > { %895 = shalt.err (!%p892_p6)
}
 0x155   : > { %s896_s20 = scalar_lea.hbm %s1201_s22, 16  ;;  %s900_s10 = scalar_lea.hbm %s1284_s19, 64 }
 0x156   : > { %p897_p7 = scmp.ne.s32.totalorder %s1201_s22, %s896_s20  ;;  %p901_p10 = scmp.lt.s32.totalorder %s1201_s22, %s1284_s19 }
 0x157   : > { %p902_p1 = scmp.lt.s32.totalorder %s900_s10, %s896_s20 }
 0x158   : > { %p898_p9 = pnand %p897_p7, %p1127_p11 }
 0x159   : > { %p903_p8 = por %p902_p1, %p901_p10 }
 0x15a   : > { %p899_p13 = pneg %p898_p9 }
 0x15c   : > { %p904_p12 = pnand %p903_p8, %p899_p13 }
 0x15e   : > { %907 = shalt.err (!%p904_p12)
}
 0x15f   : > { %721 = dma.vmem_to_hbm [thread:$0]  (%p1127_p11), %s567_s16, 16, %s1201_s22, %s552_s23  }
 0x160 PF: > { %s1285_s18 = sld [smem:[#allocation12_spill]]  ;;  %p738_p2 = scmp.ge.s32.totalorder %s982_s6, 2 }
 0x161   : > { %s1286_s0 = sld [smem:[#allocation13_spill]] }
 0x166   : > { %s578_s5 = sand.u32 1, %s1285_s18  }
 0x167   : > { %p1287_p0 = scmp.ne.s32.totalorder %s1286_s0, 0  ;;  %s579_s14 = scalar_lea.sflag [#allocation5], %s578_s5 }
 0x169   : > { %p732_p3 = pnand %p738_p2, %p1287_p0 }
 0x16b   : > { %p733_p5 = pneg %p732_p3 }
 0x16d   : > { %949 = dma.done.wait (%p733_p5), %s579_s14, 16  }
 0x16e   : > { %951 = vsyncadd (%p733_p5), %s579_s14, 4294967280  ;;  %s26_s6 = sadd.s32 1, %s982_s6   ;;  %s1288_s17 = sld [smem:[#allocation14_spill]] }
 0x16f   : > { %p23_p4 = scmp.ge.s32.totalorder %s26_s6, 6   ;;  %s1289_s26 = smov %s958_s27 }
 0x170   : > { %s1290_s27 = smov %s962_s28  ;;  %s1291_s28 = smov %s1144_s15 }
 0x171   : > { %s1292_s29 = smov %s974_s8  ;;  %s1293_s30 = smov %s978_s9 }
 0x172   : > { %s1295_s9 = smov %s1301_s25  ;;  %25 = sbr.rel (!%p23_p4) target bundleno = 13 (0xd), region = 100 }
 0x174   : > { %s1294_s8 = smov %s1288_s17 }
 0x177   :  { %583 = vsyncpa [#allocation4], 1 }
 0x178   :  { %585 = vsyncpa [#allocation4 + $0x1], 1 }
 0x179   :  { %586 = vsyncpa [#allocation7], 1 }
 0x17a   :  { %587 = vsyncpa [#allocation5], 1 }
 0x17b   :  { %589 = vsyncpa [#allocation5 + $0x1], 1 }

</bundles_post_ra>
